<compile_context>
chip_gen: v5e
topology: v5e:2x2
jax: 0.10.0
libtpu: 0.0.40
codegen_flags: <defaults>
</compile_context>

<pallas_src>
import functools

import jax
import jax.numpy as jnp
from jax.experimental import pallas as pl
from jax.experimental.pallas import tpu as pltpu


def mape_kernel(x_ref, w1_ref, b1_ref, w2_ref, b2_ref, w3_ref, b3_ref, o_ref):
    cdt = w1_ref.dtype  # bf16 MXU operand dtype

    # Cast the f32 input tile to bf16 in-kernel (no wrapper-side HBM cast pass).
    x = x_ref[...].astype(cdt)

    # Stage 1: (folded BN1 +) fc1 -> ReLU -> (dropout = id)
    h = jnp.dot(x, w1_ref[...], preferred_element_type=jnp.float32) + b1_ref[...]
    h = jnp.maximum(h, 0.0)

    # Stage 2: (folded BN2 +) fc2 -> ReLU -> (dropout = id)
    h = jnp.dot(h.astype(cdt), w2_ref[...],
                preferred_element_type=jnp.float32) + b2_ref[...]
    h = jnp.maximum(h, 0.0)

    # Stage 3: (folded BN3 +) fc3 -> narrow f32 output block
    o_ref[...] = jnp.dot(h.astype(cdt), w3_ref[...],
                         preferred_element_type=jnp.float32) + b3_ref[...]


def _round_up(x, m):
    return ((x + m - 1) // m) * m


def fold_bn_into_linear(scale, shift, w, b):
    """(x*scale + shift) @ w + b  ==  x @ (scale[:,None]*w) + (shift@w + b)."""
    w_f = scale[:, None] * w
    b_f = shift @ w + b
    return w_f.astype(jnp.float32), b_f.astype(jnp.float32)


def _pad2d(a, rows, cols):
    out = jnp.zeros((rows, cols), a.dtype)
    return out.at[: a.shape[0], : a.shape[1]].set(a)


def _pad1d(a, n):
    out = jnp.zeros((n,), a.dtype)
    return out.at[: a.shape[0]].set(a)


@functools.partial(jax.jit, static_argnames=("tile_b", "compute_dtype"))
def mape_predictor(x, params, *, tile_b=8192, compute_dtype=jnp.bfloat16):
    """x: (B, input_size) float32.  params: dict of BN scale/shift + linear W/b."""
    B, in_features = x.shape
    hidden = params["w1"].shape[1]
    out_features = params["w3"].shape[1]
    h_pad = _round_up(hidden, 128)  # lane-dense hidden width

    # ---- host-side parameter prep: fold BN, pad hidden to 128 lanes, cast ----
    w1, b1 = fold_bn_into_linear(params["s1"], params["t1"],
                                 params["w1"], params["b1"])
    w2, b2 = fold_bn_into_linear(params["s2"], params["t2"],
                                 params["w2"], params["b2"])
    w3, b3 = fold_bn_into_linear(params["s3"], params["t3"],
                                 params["w3"], params["b3"])

    # Zero-padded hidden rows/cols contribute exactly zero (relu(0)=0, 0-rows),
    # so this padding is algebraically exact.
    w1c = _pad2d(w1, in_features, h_pad).astype(compute_dtype)
    w2c = _pad2d(w2, h_pad, h_pad).astype(compute_dtype)
    w3c = _pad2d(w3, h_pad, out_features).astype(compute_dtype)
    b1r = _pad1d(b1, h_pad)[None, :]          # f32 biases (VPU path stays f32)
    b2r = _pad1d(b2, h_pad)[None, :]
    b3r = b3[None, :]

    # ---- batch tiling ----
    # Clamp so the grid has >=2 steps for moderate B (both v7x TensorCores get
    # work); keep tiles a multiple of 16 rows.
    tile_b = min(tile_b, _round_up(max(1, -(-B // 2)), 16))
    tile_b = max(16, (tile_b // 16) * 16)
    b_pad = _round_up(B, tile_b)
    xk = x if b_pad == B else jnp.pad(x, ((0, b_pad - B), (0, 0)))
    grid = (pl.cdiv(b_pad, tile_b),)

    w_itemsize = jnp.dtype(compute_dtype).itemsize
    cost = pl.CostEstimate(
        flops=2 * b_pad * (in_features * h_pad + h_pad * h_pad + h_pad * out_features),
        transcendentals=0,
        bytes_accessed=b_pad * (in_features * 4 + out_features * 4)
        + (w1c.size + w2c.size + w3c.size) * w_itemsize
        + (b1r.size + b2r.size + b3r.size) * 4,
    )

    const = lambda i: (0, 0)  # parameters: same block every step (VMEM-resident)
    out = pl.pallas_call(
        mape_kernel,
        out_shape=jax.ShapeDtypeStruct((b_pad, out_features), jnp.float32),
        grid=grid,
        in_specs=[
            pl.BlockSpec((tile_b, in_features), lambda i: (i, 0)),  # x stream (f32)
            pl.BlockSpec(w1c.shape, const),
            pl.BlockSpec(b1r.shape, const),
            pl.BlockSpec(w2c.shape, const),
            pl.BlockSpec(b2r.shape, const),
            pl.BlockSpec(w3c.shape, const),
            pl.BlockSpec(b3r.shape, const),
        ],
        out_specs=pl.BlockSpec((tile_b, out_features), lambda i: (i, 0)),
        compiler_params=pltpu.CompilerParams(
            dimension_semantics=("parallel",),
            vmem_limit_bytes=48 * 1024 * 1024,
        ),
        cost_estimate=cost,
    )(xk, w1c, b1r, w2c, b2r, w3c, b3r)

    return out if b_pad == B else out[:B]


def init_params(key, input_size, hidden_size=64, out_size=4):
    ks = jax.random.split(key, 3)

    # Linear layers (PyTorch stores (out,in); we keep (in,out) so y = x @ W + b).
    def linear(k, fan_in, fan_out):
        kw, kb = jax.random.split(k)
        bound = 1.0 / jnp.sqrt(fan_in)
        w = jax.random.uniform(kw, (fan_in, fan_out), jnp.float32, -bound, bound)
        b = jax.random.uniform(kb, (fan_out,), jnp.float32, -bound, bound)
        return w, b

    w1, b1 = linear(ks[0], input_size, hidden_size)
    w2, b2 = linear(ks[1], hidden_size, hidden_size)
    w3, b3 = linear(ks[2], hidden_size, out_size)

    # Fresh BatchNorm1d (eval): gamma=1, beta=0, running_mean=0, running_var=1.
    def bn(f, eps=1e-5):
        gamma = jnp.ones((f,), jnp.float32)
        beta = jnp.zeros((f,), jnp.float32)
        mean = jnp.zeros((f,), jnp.float32)
        var = jnp.ones((f,), jnp.float32)
        scale = gamma / jnp.sqrt(var + eps)
        shift = beta - mean * scale
        return scale, shift

    s1, t1 = bn(input_size)
    s2, t2 = bn(hidden_size)
    s3, t3 = bn(hidden_size)

    return dict(s1=s1, t1=t1, w1=w1, b1=b1,
                s2=s2, t2=t2, w2=w2, b2=b2,
                s3=s3, t3=t3, w3=w3, b3=b3)


def reference_forward(x, p):
    """Pure-JAX f32 reference of the same eval-mode forward (BN -> fc -> ReLU)."""
    h = x * p["s1"] + p["t1"]
    h = jnp.maximum(h @ p["w1"] + p["b1"], 0.0)
    h = h * p["s2"] + p["t2"]
    h = jnp.maximum(h @ p["w2"] + p["b2"], 0.0)
    h = h * p["s3"] + p["t3"]
    return h @ p["w3"] + p["b3"]


if __name__ == "__main__":
    input_size, hidden_size, batch = 32, 64, 8

    key = jax.random.PRNGKey(0)
    k_x, k_p = jax.random.split(key)
    x = jax.random.normal(k_x, (batch, input_size), jnp.float32)
    params = init_params(k_p, input_size, hidden_size)

    out = mape_predictor(x, params)
    out = jax.block_until_ready(out)

    ref = reference_forward(x, params)
    assert out.shape == (batch, 4), out.shape
    # bf16 MXU operands (f32 accumulation) vs f32 reference -> loose tolerance.
    assert jnp.allclose(out, ref, atol=2e-2, rtol=2e-2), "mismatch vs reference"

    print("KERNEL_OK")
</pallas_src>

<mosaic_0001>
module attributes {stable_mosaic.version = 11 : i64} {
  func.func @mape_kernel(%arg0: i32, %arg1: memref<16x32xf32, #tpu.memory_space<vmem>>, %arg2: memref<32x128xbf16, #tpu.memory_space<vmem>>, %arg3: memref<1x128xf32, #tpu.memory_space<vmem>>, %arg4: memref<128x128xbf16, #tpu.memory_space<vmem>>, %arg5: memref<1x128xf32, #tpu.memory_space<vmem>>, %arg6: memref<128x4xbf16, #tpu.memory_space<vmem>>, %arg7: memref<1x4xf32, #tpu.memory_space<vmem>>, %arg8: memref<16x4xf32, #tpu.memory_space<vmem>>) attributes {dimension_semantics = [#tpu.dimension_semantics<parallel>], iteration_bounds = array<i64: 1>, scalar_prefetch = 0 : i64, scratch_operands = 0 : i64, tpu.core_type = #tpu.core_type<tc>, window_params = [{transform_indices = @transform_0, window_bounds = array<i64: 16, 32>}, {pipeline_mode = #tpu.pipeline_mode<synchronous>, transform_indices = @transform_1, window_bounds = array<i64: 32, 128>}, {pipeline_mode = #tpu.pipeline_mode<synchronous>, transform_indices = @transform_2, window_bounds = array<i64: 1, 128>}, {pipeline_mode = #tpu.pipeline_mode<synchronous>, transform_indices = @transform_3, window_bounds = array<i64: 128, 128>}, {pipeline_mode = #tpu.pipeline_mode<synchronous>, transform_indices = @transform_4, window_bounds = array<i64: 1, 128>}, {pipeline_mode = #tpu.pipeline_mode<synchronous>, transform_indices = @transform_5, window_bounds = array<i64: 128, 4>}, {pipeline_mode = #tpu.pipeline_mode<synchronous>, transform_indices = @transform_6, window_bounds = array<i64: 1, 4>}, {transform_indices = @transform_7, window_bounds = array<i64: 16, 4>}]} {
    %c0 = arith.constant 0 : index
    %c0_0 = arith.constant 0 : index
    %0 = vector.load %arg1[%c0, %c0_0] : memref<16x32xf32, #tpu.memory_space<vmem>>, vector<16x32xf32>
    %1 = arith.truncf %0 : vector<16x32xf32> to vector<16x32xbf16>
    %c0_1 = arith.constant 0 : index
    %c0_2 = arith.constant 0 : index
    %2 = vector.load %arg2[%c0_1, %c0_2] : memref<32x128xbf16, #tpu.memory_space<vmem>>, vector<32x128xbf16>
    %cst = arith.constant dense<0.000000e+00> : vector<16x128xf32>
    %3 = tpu.matmul %1, %2, %cst {dimension_numbers = #tpu.dot_dimension_numbers<[1], [0], [0], [1], [0, 0, 1, 1], [], []>} : vector<16x32xbf16>, vector<32x128xbf16>, vector<16x128xf32> -> vector<16x128xf32>
    %c0_3 = arith.constant 0 : index
    %c0_4 = arith.constant 0 : index
    %4 = vector.load %arg3[%c0_3, %c0_4] : memref<1x128xf32, #tpu.memory_space<vmem>>, vector<1x128xf32>
    %5 = vector.broadcast %4 : vector<1x128xf32> to vector<16x128xf32>
    %6 = arith.addf %3, %5 : vector<16x128xf32>
    %cst_5 = arith.constant 0.000000e+00 : f32
    %7 = vector.broadcast %cst_5 : f32 to vector<16x128xf32>
    %8 = arith.maximumf %6, %7 : vector<16x128xf32>
    %9 = arith.truncf %8 : vector<16x128xf32> to vector<16x128xbf16>
    %c0_6 = arith.constant 0 : index
    %c0_7 = arith.constant 0 : index
    %10 = vector.load %arg4[%c0_6, %c0_7] : memref<128x128xbf16, #tpu.memory_space<vmem>>, vector<128x128xbf16>
    %cst_8 = arith.constant dense<0.000000e+00> : vector<16x128xf32>
    %11 = tpu.matmul %9, %10, %cst_8 {dimension_numbers = #tpu.dot_dimension_numbers<[1], [0], [0], [1], [0, 0, 1, 1], [], []>} : vector<16x128xbf16>, vector<128x128xbf16>, vector<16x128xf32> -> vector<16x128xf32>
    %c0_9 = arith.constant 0 : index
    %c0_10 = arith.constant 0 : index
    %12 = vector.load %arg5[%c0_9, %c0_10] : memref<1x128xf32, #tpu.memory_space<vmem>>, vector<1x128xf32>
    %13 = vector.broadcast %12 : vector<1x128xf32> to vector<16x128xf32>
    %14 = arith.addf %11, %13 : vector<16x128xf32>
    %cst_11 = arith.constant 0.000000e+00 : f32
    %15 = vector.broadcast %cst_11 : f32 to vector<16x128xf32>
    %16 = arith.maximumf %14, %15 : vector<16x128xf32>
    %17 = arith.truncf %16 : vector<16x128xf32> to vector<16x128xbf16>
    %c0_12 = arith.constant 0 : index
    %c0_13 = arith.constant 0 : index
    %18 = vector.load %arg6[%c0_12, %c0_13] : memref<128x4xbf16, #tpu.memory_space<vmem>>, vector<128x4xbf16>
    %cst_14 = arith.constant dense<0.000000e+00> : vector<16x4xf32>
    %19 = tpu.matmul %17, %18, %cst_14 {dimension_numbers = #tpu.dot_dimension_numbers<[1], [0], [0], [1], [0, 0, 1, 1], [], []>} : vector<16x128xbf16>, vector<128x4xbf16>, vector<16x4xf32> -> vector<16x4xf32>
    %c0_15 = arith.constant 0 : index
    %c0_16 = arith.constant 0 : index
    %20 = vector.load %arg7[%c0_15, %c0_16] : memref<1x4xf32, #tpu.memory_space<vmem>>, vector<1x4xf32>
    %21 = vector.broadcast %20 : vector<1x4xf32> to vector<16x4xf32>
    %22 = arith.addf %19, %21 : vector<16x4xf32>
    %c0_17 = arith.constant 0 : index
    %c0_18 = arith.constant 0 : index
    %23 = vector.load %arg8[%c0_17, %c0_18] : memref<16x4xf32, #tpu.memory_space<vmem>>, vector<16x4xf32>
    tpu.vector_store %arg8[%c0_17, %c0_18], %22 {strides = array<i32>} : memref<16x4xf32, #tpu.memory_space<vmem>>, vector<16x4xf32>,
    return
  }
  func.func @transform_0(%arg0: i32) -> (i32, i32) {
    %c0_i32 = arith.constant 0 : i32
    %c0_i32_0 = arith.constant 0 : i32
    return %arg0, %c0_i32 : i32, i32
  }
  func.func @transform_1(%arg0: i32) -> (i32, i32) {
    %c0_i32 = arith.constant 0 : i32
    %c0_i32_0 = arith.constant 0 : i32
    %c0_i32_1 = arith.constant 0 : i32
    return %c0_i32, %c0_i32_0 : i32, i32
  }
  func.func @transform_2(%arg0: i32) -> (i32, i32) {
    %c0_i32 = arith.constant 0 : i32
    %c0_i32_0 = arith.constant 0 : i32
    %c0_i32_1 = arith.constant 0 : i32
    return %c0_i32, %c0_i32_0 : i32, i32
  }
  func.func @transform_3(%arg0: i32) -> (i32, i32) {
    %c0_i32 = arith.constant 0 : i32
    %c0_i32_0 = arith.constant 0 : i32
    %c0_i32_1 = arith.constant 0 : i32
    return %c0_i32, %c0_i32_0 : i32, i32
  }
  func.func @transform_4(%arg0: i32) -> (i32, i32) {
    %c0_i32 = arith.constant 0 : i32
    %c0_i32_0 = arith.constant 0 : i32
    %c0_i32_1 = arith.constant 0 : i32
    return %c0_i32, %c0_i32_0 : i32, i32
  }
  func.func @transform_5(%arg0: i32) -> (i32, i32) {
    %c0_i32 = arith.constant 0 : i32
    %c0_i32_0 = arith.constant 0 : i32
    %c0_i32_1 = arith.constant 0 : i32
    return %c0_i32, %c0_i32_0 : i32, i32
  }
  func.func @transform_6(%arg0: i32) -> (i32, i32) {
    %c0_i32 = arith.constant 0 : i32
    %c0_i32_0 = arith.constant 0 : i32
    %c0_i32_1 = arith.constant 0 : i32
    return %c0_i32, %c0_i32_0 : i32, i32
  }
  func.func @transform_7(%arg0: i32) -> (i32, i32) {
    %c0_i32 = arith.constant 0 : i32
    %c0_i32_0 = arith.constant 0 : i32
    return %arg0, %c0_i32 : i32, i32
  }
}

</mosaic_0001>

<bundles_post_ra>
// kernel: mape_predictor.1
= control target key start
LH: loop header
LB: loop body
LE: loop exit
PB: predicated region body
PF: predicated region fallthrough
CT: control target
= control target key end

     0   :  { %vm50_vm0 = vcmask 261120   ;;  %vm238_vm1 = vcmask 31744   ;;  %s454_s1 = inlined_call_operand.vmem [shape: bf16[32,128], index: 1, kind: input, shape index: {}]   ;;  %s455_s0 = inlined_call_operand.vmem [shape: f32[16,32], index: 0, kind: input, shape index: {}]   ;;  %s456_s3 = inlined_call_operand.vmem [shape: bf16[128,128], index: 3, kind: input, shape index: {}]   ;;  %s457_s2 = inlined_call_operand.vmem [shape: f32[1,128], index: 2, kind: input, shape index: {}]   ;;  %s458_s4 = inlined_call_operand.vmem [shape: f32[1,128], index: 4, kind: input, shape index: {}]   ;;  %s459_s5 = inlined_call_operand.vmem [shape: bf16[128,4], index: 5, kind: input, shape index: {}]   ;;  %s460_s6 = inlined_call_operand.vmem [shape: f32[1,4], index: 6, kind: input, shape index: {}]   ;;  %s461_s7 = inlined_call_operand.vmem [shape: f32[16,4], index: 7, kind: output, shape index: {}]  }
   0x1   :  { %v319_v0 = vld [vmem:[%s454_s1 + $0x8] sm:$0xff]  ;;  %v318_v1 = vld [vmem:[%s454_s1] sm:$0xff]  ;;  %v327_v2 = vld [vmem:[%s456_s3 + $0x38] sm:$0xff] }
   0x2   :  { %60 = vmatpush.bf16.msra.mxu0 %v319_v0  ;;  %v27_v3 = vld [vmem:[%s455_s0] sm:$0xff]  ;;  %v28_v4 = vld [vmem:[%s455_s0 + $0x8] sm:$0xff]  ;;  %139 = vmatpush.bf16.msra.mxu1 %v327_v2  ;;  %v326_v5 = vld [vmem:[%s456_s3 + $0x30] sm:$0xff] }
   0x3   :  { %v29_v6 = vpack.c.bf16 %v28_v4, %v27_v3  ;;  %v325_v7 = vld [vmem:[%s456_s3 + $0x28] sm:$0xff]  ;;  %v324_v8 = vld [vmem:[%s456_s3 + $0x20] sm:$0xff]  ;;  %v323_v9 = vld [vmem:[%s456_s3 + $0x18] sm:$0xff] }
   0x4   :  { %v322_v10 = vld [vmem:[%s456_s3 + $0x10] sm:$0xff]  ;;  %v321_v11 = vld [vmem:[%s456_s3 + $0x8] sm:$0xff]  ;;  %v320_v12 = vld [vmem:[%s456_s3] sm:$0xff] }
   0x5   :  { %v335_v13 = vld [vmem:[%s459_s5 + $0x38] sm:$0xff]  ;;  %v334_v14 = vld [vmem:[%s459_s5 + $0x30] sm:$0xff]  ;;  %v333_v15 = vld [vmem:[%s459_s5 + $0x28] sm:$0xff] }
   0x6   :  { %61 = vmatpush.bf16.msra.mxu0 %v318_v1  ;;  %140 = vmatpush.bf16.msra.mxu1 %v326_v5  ;;  %v332_v16 = vld [vmem:[%s459_s5 + $0x20] sm:$0xff]  ;;  %v331_v25 = vld [vmem:[%s459_s5 + $0x18] sm:$0xff]  ;;  %v330_v26 = vld [vmem:[%s459_s5 + $0x10] sm:$0xff] }
   0x7   :  { %224 = vmatpush.bf16.msra.mxu2 %v335_v13  ;;  %v336_v18 = vld [vmem:[%s457_s2] ss:$0 sm:$0xff]  ;;  %v329_v27 = vld [vmem:[%s459_s5 + $0x8] sm:$0xff] }
   0x8   :  { %v328_v28 = vld [vmem:[%s459_s5] sm:$0xff] }
   0x9   :  { %253 = vmatmul.msk.bf16.vlgmr.msra.gmra.mxu0 %vm50_vm0, %v29_v6  ;;  %v337_v30 = vld [vmem:[%s458_s4] ss:$0 sm:$0xff] }
   0xa   :  { %141 = vmatpush.bf16.msra.mxu1 %v325_v7  ;;  %v338_v37 = vld [vmem:[%s460_s6] ss:$0 sm:$0xff] }
   0xb   :  { %225 = vmatpush.bf16.msra.mxu2 %v334_v14 }
   0xe   :  { %142 = vmatpush.bf16.msra.mxu1 %v324_v8 }
   0xf   :  { %226 = vmatpush.bf16.msra.mxu2 %v333_v15 }
  0x12   :  { %143 = vmatpush.bf16.msra.mxu1 %v323_v9 }
  0x13   :  { %227 = vmatpush.bf16.msra.mxu2 %v332_v16 }
  0x16   :  { %144 = vmatpush.bf16.msra.mxu1 %v322_v10 }
  0x17   :  { %228 = vmatpush.bf16.msra.mxu2 %v331_v25 }
  0x1a   :  { %145 = vmatpush.bf16.msra.mxu1 %v321_v11 }
  0x1b   :  { %229 = vmatpush.bf16.msra.mxu2 %v330_v26 }
  0x1e   :  { %146 = vmatpush.bf16.msra.mxu1 %v320_v12 }
  0x1f   :  { %230 = vmatpush.bf16.msra.mxu2 %v329_v27 }
  0x23   :  { %231 = vmatpush.bf16.msra.mxu2 %v328_v28 }
  0x86   :  { %v63_v17 = vpop.f32.mrf.mxu0 }
  0x87   :  { %v64_v19 = vadd.f32 %v336_v18, %v63_v17 }
  0x89   :  { %v68_v22 = vmax.f32 %v64_v19, 0.0 }
  0x8e   :  { %v65_v20 = vpop.f32.mrf.mxu0 }
  0x8f   :  { %v66_v21 = vadd.f32 %v336_v18, %v65_v20 }
  0x91   :  { %v69_v23 = vmax.f32 %v66_v21, 0.0 }
  0x93   :  { %v70_v24 = vpack.c.bf16 %v69_v23, %v68_v22 }
  0x95   :  { %147 = vmatmul.bf16.vlgmr.msra.gmra.mxu1 %v70_v24 }
 0x112   :  { %v148_v29 = vpop.f32.mrf.mxu1 }
 0x113   :  { %v149_v31 = vadd.f32 %v337_v30, %v148_v29 }
 0x115   :  { %v153_v34 = vmax.f32 %v149_v31, 0.0 }
 0x11a   :  { %v150_v32 = vpop.f32.mrf.mxu1 }
 0x11b   :  { %v151_v33 = vadd.f32 %v337_v30, %v150_v32 }
 0x11d   :  { %v154_v35 = vmax.f32 %v151_v33, 0.0 }
 0x11f   :  { %v155_v36 = vpack.c.bf16 %v154_v35, %v153_v34 }
 0x121   :  { %232 = vmatmul.bf16.vlgmr.msra.gmra.mxu2 %v155_v36 }
 0x1a4   :  { %v233_v38 = vpop.f32.mrf.mxu2 }
 0x1a5   :  { %v234_v39 = vadd.f32 %v338_v37, %v233_v38 }
 0x1a7   :  { %239 = vst.msk [vmem:[%s461_s7] sm:$0xff] %vm238_vm1, %v234_v39 }
 0x1ac   :  { %v235_v40 = vpop.f32.mrf.mxu2 }
 0x1ad   :  { %v236_v41 = vadd.f32 %v338_v37, %v235_v40 }
 0x1af   :  { %240 = vst.msk [vmem:[%s461_s7 + $0x8] sm:$0xff] %vm238_vm1, %v236_v41 }

</bundles_post_ra>
